<compile_context>
chip_gen: v7x
topology: tpu7x:2x2x1
jax: 0.10.0
libtpu: 0.0.40
codegen_flags: <defaults>
</compile_context>

<pallas_src>
import jax
import jax.numpy as jnp
from jax.experimental import pallas as pl
from jax.experimental.pallas import tpu as pltpu


def _round_up(x, m):
    return ((x + m - 1) // m) * m


def _prenet_body(x_ref, w1_ref, b1_ref, w2_ref, b2_ref, o_ref, bits_ref):
    """Linear -> ReLU -> Dropout(0.5), twice, for one row tile."""
    h1 = w1_ref.shape[-1]
    h2 = w2_ref.shape[-1]

    # ---- layer 1: Linear (bf16 MXU, f32 acc) -> bias -> ReLU -> Dropout ----
    h = jnp.dot(x_ref[...], w1_ref[...], preferred_element_type=jnp.float32)
    h = jnp.maximum(h + b1_ref[...], 0.0)
    if bits_ref is not None:
        bits = bits_ref[...]                                        # (tile, max(H1,H2)) uint32
        keep1 = (bits[:, :h1] & jnp.uint32(0x80000000)) != 0        # P(keep) = 0.5
        h = jnp.where(keep1, h * 2.0, 0.0)                          # inverted dropout 1/(1-p)

    # ---- layer 2: Linear (bf16 MXU, f32 acc) -> bias -> ReLU -> Dropout ----
    y = jnp.dot(h.astype(w2_ref.dtype), w2_ref[...], preferred_element_type=jnp.float32)
    y = jnp.maximum(y + b2_ref[...], 0.0)
    if bits_ref is not None:
        keep2 = (bits[:, :h2] & jnp.uint32(0x40000000)) != 0        # independent bit of same draw
        y = jnp.where(keep2, y * 2.0, 0.0)

    o_ref[...] = y.astype(o_ref.dtype)


def _train_kernel(x_ref, w1_ref, b1_ref, w2_ref, b2_ref, bits_ref, o_ref):
    _prenet_body(x_ref, w1_ref, b1_ref, w2_ref, b2_ref, o_ref, bits_ref)


def _eval_kernel(x_ref, w1_ref, b1_ref, w2_ref, b2_ref, o_ref):
    _prenet_body(x_ref, w1_ref, b1_ref, w2_ref, b2_ref, o_ref, None)


def prenet_seqwise(x_tnd, w1, b1, w2, b2, *, training=True, seed=0, row_tile=512):
    """x_tnd: (T, N, in_dim) float32. Weights stored (in, out). Returns (T, N, sizes[-1])."""
    T, N, D = x_tnd.shape
    H1 = w1.shape[1]
    H2 = w2.shape[1]
    rows = T * N

    # Large MXU-friendly row tiles; shrink for tiny inputs, pad rows to a tile multiple.
    row_tile = min(_round_up(row_tile, 8), _round_up(rows, 8))
    rows_p = _round_up(rows, row_tile)
    # Pad contraction dim to a full 128-lane vreg so the first matmul isn't K-starved.
    Kp = _round_up(D, 128)

    x2d = x_tnd.reshape(rows, D).astype(jnp.float32)        # SequenceWise: (T, N) -> T*N
    if rows_p != rows or Kp != D:
        x2d = jnp.pad(x2d, ((0, rows_p - rows), (0, Kp - D)))
    x2d = x2d.astype(jnp.bfloat16)

    w1p = jnp.pad(w1, ((0, Kp - D), (0, 0))) if Kp != D else w1
    w1p = w1p.astype(jnp.bfloat16)
    w2b = w2.astype(jnp.bfloat16)
    b1_2d = b1.reshape(1, H1).astype(jnp.float32)
    b2_2d = b2.reshape(1, H2).astype(jnp.float32)

    grid = (rows_p // row_tile,)
    in_specs = [
        pl.BlockSpec((row_tile, Kp), lambda i: (i, 0)),     # x tile
        pl.BlockSpec((Kp, H1), lambda i: (0, 0)),           # w1 (resident)
        pl.BlockSpec((1, H1), lambda i: (0, 0)),            # b1
        pl.BlockSpec((H1, H2), lambda i: (0, 0)),           # w2 (resident)
        pl.BlockSpec((1, H2), lambda i: (0, 0)),            # b2
    ]
    args = [x2d, w1p, b1_2d, w2b, b2_2d]

    if training:
        hb = max(H1, H2)
        # Single deterministic draw of random bits, reused for both dropout layers.
        bits = jax.random.bits(jax.random.PRNGKey(seed), (rows_p, hb), dtype=jnp.uint32)
        in_specs.append(pl.BlockSpec((row_tile, hb), lambda i: (i, 0)))
        args.append(bits)
        kernel = _train_kernel
    else:
        kernel = _eval_kernel

    out2d = pl.pallas_call(
        kernel,
        out_shape=jax.ShapeDtypeStruct((rows_p, H2), x_tnd.dtype),
        grid=grid,
        in_specs=in_specs,
        out_specs=pl.BlockSpec((row_tile, H2), lambda i: (i, 0)),
        compiler_params=pltpu.CompilerParams(
            dimension_semantics=("parallel",)   # tiles independent -> megacore-shardable
        ),
    )(*args)

    return out2d[:rows].reshape(T, N, H2)


def init_params(key, in_dim, sizes):
    """Deterministic parameter init (PyTorch-Linear-style uniform bounds)."""
    in_sizes = [in_dim] + sizes[:-1]
    params = []
    for in_s, out_s in zip(in_sizes, sizes):
        key, kw, kb = jax.random.split(key, 3)
        bound = 1.0 / jnp.sqrt(in_s)
        w = jax.random.uniform(kw, (in_s, out_s), jnp.float32, -bound, bound)
        b = jax.random.uniform(kb, (out_s,), jnp.float32, -bound, bound)
        params.extend([w, b])
    return params


def _reference_eval(x_tnd, w1, b1, w2, b2):
    """Pure-JAX reference for eval mode (dropout = identity), same bf16 matmul dtype."""
    T, N, D = x_tnd.shape
    x = x_tnd.reshape(T * N, D)
    h = jnp.maximum(
        jnp.dot(x.astype(jnp.bfloat16), w1.astype(jnp.bfloat16),
                preferred_element_type=jnp.float32) + b1, 0.0)
    y = jnp.maximum(
        jnp.dot(h.astype(jnp.bfloat16), w2.astype(jnp.bfloat16),
                preferred_element_type=jnp.float32) + b2, 0.0)
    return y.reshape(T, N, -1)


if __name__ == "__main__":
    # Small shapes consistent with the module: seq T=8, batch N=2, in_dim=32,
    # default Prenet sizes=[256, 128].
    T, N, in_dim = 8, 2, 32
    sizes = [256, 128]

    key = jax.random.PRNGKey(0)
    kx, kp = jax.random.split(key)
    x = jax.random.normal(kx, (T, N, in_dim), dtype=jnp.float32)
    w1, b1, w2, b2 = init_params(kp, in_dim, sizes)

    # Training mode (dropout active).
    out_train = prenet_seqwise(x, w1, b1, w2, b2, training=True, seed=0)
    out_train = jax.block_until_ready(out_train)
    assert out_train.shape == (T, N, sizes[-1]), out_train.shape
    assert bool(jnp.all(jnp.isfinite(out_train)))

    # Eval mode (dropout = identity) checked against a pure-JAX reference.
    out_eval = prenet_seqwise(x, w1, b1, w2, b2, training=False)
    out_eval = jax.block_until_ready(out_eval)
    ref_eval = _reference_eval(x, w1, b1, w2, b2)
    assert out_eval.shape == ref_eval.shape
    assert bool(jnp.allclose(out_eval, ref_eval, rtol=2e-2, atol=2e-2)), \
        float(jnp.max(jnp.abs(out_eval - ref_eval)))

    print("KERNEL_OK")
</pallas_src>

<mosaic_0001>
module attributes {stable_mosaic.version = 11 : i64} {
  func.func @_train_kernel(%arg0: i32, %arg1: memref<16x128xbf16, #tpu.memory_space<vmem>>, %arg2: memref<128x256xbf16, #tpu.memory_space<vmem>>, %arg3: memref<1x256xf32, #tpu.memory_space<vmem>>, %arg4: memref<256x128xbf16, #tpu.memory_space<vmem>>, %arg5: memref<1x128xf32, #tpu.memory_space<vmem>>, %arg6: memref<16x256xi32, #tpu.memory_space<vmem>>, %arg7: memref<16x128xf32, #tpu.memory_space<vmem>>) attributes {dimension_semantics = [#tpu.dimension_semantics<parallel>], iteration_bounds = array<i64: 1>, scalar_prefetch = 0 : i64, scratch_operands = 0 : i64, tpu.core_type = #tpu.core_type<tc>, window_params = [{transform_indices = @transform_0, window_bounds = array<i64: 16, 128>}, {pipeline_mode = #tpu.pipeline_mode<synchronous>, transform_indices = @transform_1, window_bounds = array<i64: 128, 256>}, {pipeline_mode = #tpu.pipeline_mode<synchronous>, transform_indices = @transform_2, window_bounds = array<i64: 1, 256>}, {pipeline_mode = #tpu.pipeline_mode<synchronous>, transform_indices = @transform_3, window_bounds = array<i64: 256, 128>}, {pipeline_mode = #tpu.pipeline_mode<synchronous>, transform_indices = @transform_4, window_bounds = array<i64: 1, 128>}, {transform_indices = @transform_5, window_bounds = array<i64: 16, 256>}, {transform_indices = @transform_6, window_bounds = array<i64: 16, 128>}]} {
    %c0 = arith.constant 0 : index
    %c0_0 = arith.constant 0 : index
    %0 = vector.load %arg1[%c0, %c0_0] : memref<16x128xbf16, #tpu.memory_space<vmem>>, vector<16x128xbf16>
    %c0_1 = arith.constant 0 : index
    %c0_2 = arith.constant 0 : index
    %1 = vector.load %arg2[%c0_1, %c0_2] : memref<128x256xbf16, #tpu.memory_space<vmem>>, vector<128x256xbf16>
    %cst = arith.constant dense<0.000000e+00> : vector<16x256xf32>
    %2 = tpu.matmul %0, %1, %cst {dimension_numbers = #tpu.dot_dimension_numbers<[1], [0], [0], [1], [0, 0, 1, 1], [], []>} : vector<16x128xbf16>, vector<128x256xbf16>, vector<16x256xf32> -> vector<16x256xf32>
    %c0_3 = arith.constant 0 : index
    %c0_4 = arith.constant 0 : index
    %3 = vector.load %arg3[%c0_3, %c0_4] : memref<1x256xf32, #tpu.memory_space<vmem>>, vector<1x256xf32>
    %4 = vector.broadcast %3 : vector<1x256xf32> to vector<16x256xf32>
    %5 = arith.addf %2, %4 : vector<16x256xf32>
    %cst_5 = arith.constant 0.000000e+00 : f32
    %6 = vector.broadcast %cst_5 : f32 to vector<16x256xf32>
    %7 = arith.maximumf %5, %6 : vector<16x256xf32>
    %c0_6 = arith.constant 0 : index
    %c0_7 = arith.constant 0 : index
    %8 = vector.load %arg6[%c0_6, %c0_7] : memref<16x256xi32, #tpu.memory_space<vmem>>, vector<16x256xi32>
    %c-2147483648_i32 = arith.constant -2147483648 : i32
    %9 = vector.broadcast %c-2147483648_i32 : i32 to vector<16x256xi32>
    %10 = arith.andi %8, %9 : vector<16x256xi32>
    %c0_i32 = arith.constant 0 : i32
    %11 = vector.broadcast %c0_i32 : i32 to vector<16x256xi32>
    %12 = arith.cmpi ne, %10, %11 : vector<16x256xi32>
    %cst_8 = arith.constant 2.000000e+00 : f32
    %13 = vector.broadcast %cst_8 : f32 to vector<16x256xf32>
    %14 = arith.mulf %7, %13 : vector<16x256xf32>
    %cst_9 = arith.constant 0.000000e+00 : f32
    %15 = vector.broadcast %cst_9 : f32 to vector<16x256xf32>
    %16 = arith.select %12, %14, %15 : vector<16x256xi1>, vector<16x256xf32>
    %17 = arith.truncf %16 : vector<16x256xf32> to vector<16x256xbf16>
    %c0_10 = arith.constant 0 : index
    %c0_11 = arith.constant 0 : index
    %18 = vector.load %arg4[%c0_10, %c0_11] : memref<256x128xbf16, #tpu.memory_space<vmem>>, vector<256x128xbf16>
    %cst_12 = arith.constant dense<0.000000e+00> : vector<16x128xf32>
    %19 = tpu.matmul %17, %18, %cst_12 {dimension_numbers = #tpu.dot_dimension_numbers<[1], [0], [0], [1], [0, 0, 1, 1], [], []>} : vector<16x256xbf16>, vector<256x128xbf16>, vector<16x128xf32> -> vector<16x128xf32>
    %c0_13 = arith.constant 0 : index
    %c0_14 = arith.constant 0 : index
    %20 = vector.load %arg5[%c0_13, %c0_14] : memref<1x128xf32, #tpu.memory_space<vmem>>, vector<1x128xf32>
    %21 = vector.broadcast %20 : vector<1x128xf32> to vector<16x128xf32>
    %22 = arith.addf %19, %21 : vector<16x128xf32>
    %cst_15 = arith.constant 0.000000e+00 : f32
    %23 = vector.broadcast %cst_15 : f32 to vector<16x128xf32>
    %24 = arith.maximumf %22, %23 : vector<16x128xf32>
    %25 = vector.extract_strided_slice %8 {offsets = [0, 0], sizes = [16, 128], strides = [1, 1]} : vector<16x256xi32> to vector<16x128xi32>
    %c1073741824_i32 = arith.constant 1073741824 : i32
    %26 = vector.broadcast %c1073741824_i32 : i32 to vector<16x128xi32>
    %27 = arith.andi %25, %26 : vector<16x128xi32>
    %c0_i32_16 = arith.constant 0 : i32
    %28 = vector.broadcast %c0_i32_16 : i32 to vector<16x128xi32>
    %29 = arith.cmpi ne, %27, %28 : vector<16x128xi32>
    %cst_17 = arith.constant 2.000000e+00 : f32
    %30 = vector.broadcast %cst_17 : f32 to vector<16x128xf32>
    %31 = arith.mulf %24, %30 : vector<16x128xf32>
    %cst_18 = arith.constant 0.000000e+00 : f32
    %32 = vector.broadcast %cst_18 : f32 to vector<16x128xf32>
    %33 = arith.select %29, %31, %32 : vector<16x128xi1>, vector<16x128xf32>
    %c0_19 = arith.constant 0 : index
    %c0_20 = arith.constant 0 : index
    %34 = vector.load %arg7[%c0_19, %c0_20] : memref<16x128xf32, #tpu.memory_space<vmem>>, vector<16x128xf32>
    tpu.vector_store %arg7[%c0_19, %c0_20], %33 {strides = array<i32>} : memref<16x128xf32, #tpu.memory_space<vmem>>, vector<16x128xf32>,
    return
  }
  func.func @transform_0(%arg0: i32) -> (i32, i32) {
    %c0_i32 = arith.constant 0 : i32
    %c0_i32_0 = arith.constant 0 : i32
    return %arg0, %c0_i32 : i32, i32
  }
  func.func @transform_1(%arg0: i32) -> (i32, i32) {
    %c0_i32 = arith.constant 0 : i32
    %c0_i32_0 = arith.constant 0 : i32
    %c0_i32_1 = arith.constant 0 : i32
    return %c0_i32, %c0_i32_0 : i32, i32
  }
  func.func @transform_2(%arg0: i32) -> (i32, i32) {
    %c0_i32 = arith.constant 0 : i32
    %c0_i32_0 = arith.constant 0 : i32
    %c0_i32_1 = arith.constant 0 : i32
    return %c0_i32, %c0_i32_0 : i32, i32
  }
  func.func @transform_3(%arg0: i32) -> (i32, i32) {
    %c0_i32 = arith.constant 0 : i32
    %c0_i32_0 = arith.constant 0 : i32
    %c0_i32_1 = arith.constant 0 : i32
    return %c0_i32, %c0_i32_0 : i32, i32
  }
  func.func @transform_4(%arg0: i32) -> (i32, i32) {
    %c0_i32 = arith.constant 0 : i32
    %c0_i32_0 = arith.constant 0 : i32
    %c0_i32_1 = arith.constant 0 : i32
    return %c0_i32, %c0_i32_0 : i32, i32
  }
  func.func @transform_5(%arg0: i32) -> (i32, i32) {
    %c0_i32 = arith.constant 0 : i32
    %c0_i32_0 = arith.constant 0 : i32
    return %arg0, %c0_i32 : i32, i32
  }
  func.func @transform_6(%arg0: i32) -> (i32, i32) {
    %c0_i32 = arith.constant 0 : i32
    %c0_i32_0 = arith.constant 0 : i32
    return %arg0, %c0_i32 : i32, i32
  }
}

</mosaic_0001>

<bundles_post_ra>
// kernel: tpu_custom_call.1
= control target key start
LH: loop header
LB: loop body
LE: loop exit
PB: predicated region body
PF: predicated region fallthrough
CT: control target
= control target key end

     0   :  { %11 = vsyncpa [#allocation3], 0  ;;  %s831_s0 = inlined_call_operand.hbm [shape: bf16[16,128], index: 0, kind: input, shape index: {}]   ;;  %s832_s1 = inlined_call_operand.hbm [shape: bf16[128,256], index: 1, kind: input, shape index: {}]   ;;  %s833_s2 = inlined_call_operand.vmem [shape: f32[1,256], index: 2, kind: input, shape index: {}]   ;;  %s834_s3 = inlined_call_operand.hbm [shape: bf16[256,128], index: 3, kind: input, shape index: {}]   ;;  %s835_s4 = inlined_call_operand.vmem [shape: f32[1,128], index: 4, kind: input, shape index: {}]   ;;  %s836_s5 = inlined_call_operand.hbm [shape: u32[16,256], index: 5, kind: input, shape index: {}]   ;;  %s837_s6 = inlined_call_operand.hbm [shape: f32[16,128], index: 6, kind: output, shape index: {}]  }
   0x1   :  { %12 = vsyncpa [#allocation6], 0 }
   0x2   :  { %13 = vsyncpa [#allocation9], 0 }
   0x3   :  { %14 = vsyncpa [#allocation4], 0  ;;  %s705_s21 = smov [#allocation5]   ;;  %s587_s25 = scalar_lea.hbm %s832_s1, 2048 }
   0x4   :  { %s32_s22 = sshll.u32 %s705_s21, 4  ;;  %p588_p0 = scmp.ne.s32.totalorder %s832_s1, %s587_s25  ;;  %s33_s22 = int_to_ptr.vmem [resolvable:$true] %s32_s22 }
   0x5   :  { %p591_p1 = scmp.lt.u32.totalorder %s587_s25, %s832_s1 }
   0x7   :  { %p593_p2 = pnand %p591_p1, %p588_p0 }
   0x9   :  { %596 = shalt.err (!%p593_p2)
}
   0xa   :  { %s597_s30 = scalar_lea.vmem %s33_s22, 2048  ;;  %p602_p4 = scmp.lt.s32.totalorder %s33_s22, %s33_s22 }
   0xb   :  { %p598_p3 = scmp.ne.s32.totalorder %s33_s22, %s597_s30  ;;  %p603_p5 = scmp.lt.s32.totalorder %s597_s30, %s597_s30 }
   0xd   :  { %p604_p6 = por %p603_p5, %p602_p4 }
   0xf   :  { %p605_p7 = pnand %p604_p6, %p598_p3 }
  0x11   :  { %608 = shalt.err (!%p605_p7)
}
  0x12   :  { %s706_s7 = smov 128   ;;  %s707_s8 = smov 8  }
  0x13   :  { %38 = dma.hbm_to_vmem [thread:$0]  %s832_s1, 2048, %s33_s22, [#allocation6], %s706_s7, %s706_s7, %s707_s8  }
  0x14   :  { %s708_s11 = smov [#allocation2]   ;;  %s609_s15 = scalar_lea.hbm %s831_s0, 128 }
  0x15   :  { %s20_s12 = sshll.u32 %s708_s11, 4  ;;  %p610_p8 = scmp.ne.s32.totalorder %s831_s0, %s609_s15  ;;  %s21_s12 = int_to_ptr.vmem [resolvable:$true] %s20_s12 }
  0x16   :  { %p613_p9 = scmp.lt.u32.totalorder %s609_s15, %s831_s0 }
  0x18   :  { %p615_p10 = pnand %p613_p9, %p610_p8 }
  0x1a   :  { %618 = shalt.err (!%p615_p10)
}
  0x1b   :  { %s619_s20 = scalar_lea.vmem %s21_s12, 128  ;;  %p624_p12 = scmp.lt.s32.totalorder %s21_s12, %s21_s12 }
  0x1c   :  { %p620_p11 = scmp.ne.s32.totalorder %s21_s12, %s619_s20  ;;  %p625_p13 = scmp.lt.s32.totalorder %s619_s20, %s619_s20 }
  0x1e   :  { %p626_p0 = por %p625_p13, %p624_p12 }
  0x20   :  { %p627_p1 = pnand %p626_p0, %p620_p11 }
  0x22   :  { %630 = shalt.err (!%p627_p1)
}
  0x23   :  { %s709_s1 = smov 64   ;;  %s710_s21 = smov 4  }
  0x24   :  { %26 = dma.hbm_to_vmem [thread:$0]  %s831_s0, 128, %s21_s12, [#allocation3], %s709_s1, %s709_s1, %s710_s21  }
  0x25   :  { %s711_s24 = smov [#allocation7]   ;;  %s712_s26 = smov [#allocation8]  }
  0x26   :  { %s46_s25 = sshll.u32 %s711_s24, 4  ;;  %s60_s27 = sshll.u32 %s712_s26, 4  ;;  %s47_s25 = int_to_ptr.vmem [resolvable:$true] %s46_s25  ;;  %s779_s27 = int_to_ptr.vmem [resolvable:$true] %s60_s27 }
  0x27   :  { %s631_s30 = scalar_lea.hbm %s834_s3, 2048 }
  0x28   :  { %p632_p2 = scmp.ne.s32.totalorder %s834_s3, %s631_s30  ;;  %p635_p3 = scmp.lt.u32.totalorder %s631_s30, %s834_s3 }
  0x2a   :  { %p637_p4 = pnand %p635_p3, %p632_p2 }
  0x2c   :  { %640 = shalt.err (!%p637_p4)
}
  0x2d   :  { %s641_s0 = scalar_lea.vmem %s47_s25, 2048  ;;  %p646_p6 = scmp.lt.s32.totalorder %s47_s25, %s47_s25 }
  0x2e   :  { %p642_p5 = scmp.ne.s32.totalorder %s47_s25, %s641_s0  ;;  %p647_p7 = scmp.lt.s32.totalorder %s641_s0, %s641_s0 }
  0x30   :  { %p648_p8 = por %p647_p7, %p646_p6 }
  0x32   :  { %p649_p9 = pnand %p648_p8, %p642_p5 }
  0x34   :  { %652 = shalt.err (!%p649_p9)
}
  0x35   :  { %52 = dma.hbm_to_vmem [thread:$0]  %s834_s3, 2048, %s47_s25, [#allocation6], %s709_s1, %s709_s1, %s710_s21  }
  0x36   :  { %s653_s17 = scalar_lea.hbm %s836_s5, 512 }
  0x37   :  { %p654_p10 = scmp.ne.s32.totalorder %s836_s5, %s653_s17  ;;  %p657_p11 = scmp.lt.u32.totalorder %s653_s17, %s836_s5 }
  0x39   :  { %p659_p12 = pnand %p657_p11, %p654_p10 }
  0x3b   :  { %662 = shalt.err (!%p659_p12)
}
  0x3c   :  { %s663_s23 = scalar_lea.vmem %s779_s27, 512  ;;  %p668_p0 = scmp.lt.s32.totalorder %s779_s27, %s779_s27 }
  0x3d   :  { %p664_p13 = scmp.ne.s32.totalorder %s779_s27, %s663_s23  ;;  %p669_p1 = scmp.lt.s32.totalorder %s663_s23, %s663_s23 }
  0x3f   :  { %p670_p2 = por %p669_p1, %p668_p0 }
  0x41   :  { %p671_p3 = pnand %p670_p2, %p664_p13 }
  0x43   :  { %674 = shalt.err (!%p671_p3)
}
  0x44   :  { %s713_s3 = smov 256   ;;  %s714_s1 = smov 16  }
  0x45   :  { %66 = dma.hbm_to_vmem [thread:$0]  %s836_s5, 512, %s779_s27, [#allocation9], %s713_s3, %s713_s3, %s714_s1  }
  0x46   :  { %697 = dma.done.wait [#allocation3], 128  }
  0x47   :  { %698 = vsyncadd [#allocation3], 4294967168 }
  0x48   :  { %699 = dma.done.wait [#allocation6], 4096  }
  0x49   :  { %700 = vsyncadd [#allocation6], 4294963200 }
  0x4a   :  { %701 = dma.done.wait [#allocation9], 512  }
  0x4b   :  { %702 = vsyncadd [#allocation9], 4294966784  ;;  %v715_v0 = vmov 0   ;;  %v546_v1 = vld [vmem:[#allocation5 + $0x4] ss:$8 sps:$4 sm:$0xff]   ;;  %v575_v16 = vld [vmem:[#allocation7 + $0x50] sm:$0xff]   ;;  %v100_v34 = vlaneseq }
  0x4c   :  { %228 = vmatprep.mubr.bf16.mxu0 %v715_v0  ;;  %v548_v2 = vld [vmem:[#allocation5] ss:$8 sps:$4 sm:$0xff]   ;;  %196 = vmatprep.subr.bf16.mxu0 %v546_v1  ;;  %v549_v3 = vld [vmem:[#allocation5 + $0x14] ss:$8 sps:$4 sm:$0xff]   ;;  %v551_v4 = vld [vmem:[#allocation5 + $0x10] ss:$8 sps:$4 sm:$0xff]  }
  0x4d   :  { %197 = vmatpush1.bf16.msra.mxu0 %v548_v2  ;;  %v552_v5 = vld [vmem:[#allocation5 + $0x24] ss:$8 sps:$4 sm:$0xff]   ;;  %v554_v6 = vld [vmem:[#allocation5 + $0x20] ss:$8 sps:$4 sm:$0xff]   ;;  %v555_v7 = vld [vmem:[#allocation5 + $0x34] ss:$8 sps:$4 sm:$0xff]  }
  0x4e   :  { %198 = vmatprep.subr.bf16.mxu0 %v549_v3  ;;  %v557_v8 = vld [vmem:[#allocation5 + $0x30] ss:$8 sps:$4 sm:$0xff]   ;;  %v558_v9 = vld [vmem:[#allocation5 + $0x44] ss:$8 sps:$4 sm:$0xff]   ;;  %v560_v11 = vld [vmem:[#allocation5 + $0x40] ss:$8 sps:$4 sm:$0xff]  }
  0x4f   :  { %v571_v10 = vld [vmem:[#allocation7 + $0x40] sm:$0xff]   ;;  %v561_v13 = vld [vmem:[#allocation5 + $0x54] ss:$8 sps:$4 sm:$0xff]   ;;  %v573_v14 = vld [vmem:[#allocation7 + $0x48] sm:$0xff]   ;;  %v101_v35 = vshrl.u32 %v100_v34, 7  ;;  %s716_s27 = smov [#allocation10]  }
  0x50   :  { %v572_v12 = vld [vmem:[#allocation7] sm:$0xff]   ;;  %512 = vmatprep.subr.bf16.mxu1 %v571_v10  ;;  %v574_v15 = vld [vmem:[#allocation7 + $0x8] sm:$0xff]   ;;  %v563_v17 = vld [vmem:[#allocation5 + $0x50] ss:$8 sps:$4 sm:$0xff]   ;;  %s458_s28 = sshll.u32 %s716_s27, 4  ;;  %s459_s28 = int_to_ptr.vmem [resolvable:$true] %s458_s28 }
  0x51   :  { %199 = vmatpush1.bf16.msra.mxu0 %v551_v4  ;;  %513 = vmatpush3.bf16.msra.mxu1 %v572_v12  ;;  %v564_v18 = vld [vmem:[#allocation5 + $0x64] ss:$8 sps:$4 sm:$0xff]   ;;  %v576_v19 = vld [vmem:[#allocation7 + $0x10] sm:$0xff]   ;;  %v577_v20 = vld [vmem:[#allocation7 + $0x58] sm:$0xff]   ;;  %v102_v36 = vsub.s32 0, %v101_v35  ;;  %v106_v38 = vsub.s32 1, %v101_v35  ;;  %p680_p5 = scmp.lt.s32.totalorder %s459_s28, %s459_s28 }
  0x52   :  { %200 = vmatprep.subr.bf16.mxu0 %v552_v5  ;;  %514 = vmatprep.subr.bf16.mxu1 %v573_v14  ;;  %v566_v21 = vld [vmem:[#allocation5 + $0x60] ss:$8 sps:$4 sm:$0xff]   ;;  %v578_v22 = vld [vmem:[#allocation7 + $0x18] sm:$0xff]   ;;  %v583_v30 = vld [vmem:[#allocation7 + $0x70] sm:$0xff]  }
  0x53   :  { %v567_v23 = vld [vmem:[#allocation5 + $0x74] ss:$8 sps:$4 sm:$0xff]   ;;  %v579_v24 = vld [vmem:[#allocation7 + $0x60] sm:$0xff]   ;;  %v569_v25 = vld [vmem:[#allocation5 + $0x70] ss:$8 sps:$4 sm:$0xff]  }
  0x54   :  { %v580_v26 = vld [vmem:[#allocation7 + $0x20] sm:$0xff]   ;;  %v570_v27 = vld [vmem:[#allocation2] sm:$0xff]   ;;  %v581_v28 = vld [vmem:[#allocation7 + $0x68] sm:$0xff]  }
  0x55   :  { %201 = vmatpush1.bf16.msra.mxu0 %v554_v6  ;;  %515 = vmatpush3.bf16.msra.mxu1 %v574_v15  ;;  %v582_v29 = vld [vmem:[#allocation7 + $0x28] sm:$0xff]   ;;  %v584_v31 = vld [vmem:[#allocation7 + $0x30] sm:$0xff]   ;;  %v585_v32 = vld [vmem:[#allocation7 + $0x78] sm:$0xff]  }
  0x56   :  { %202 = vmatprep.subr.bf16.mxu0 %v555_v7  ;;  %516 = vmatprep.subr.bf16.mxu1 %v575_v16  ;;  %v586_v33 = vld [vmem:[#allocation7 + $0x38] sm:$0xff]   ;;  %v244_v41 = vld [vmem:[#allocation8 + $0x8] sm:$0xff]  ;;  %v243_v44 = vld [vmem:[#allocation8] sm:$0xff] }
  0x57   :  { %v98_v37 = vld [vmem:[%s833_s2] sm:$0x3]  ;;  %v245_v45 = vld [vmem:[#allocation8 + $0x10] sm:$0xff]  ;;  %v248_v50 = vand.u32 2147483648, %v244_v41  ;;  %v247_v55 = vand.u32 2147483648, %v243_v44 }
  0x58   :  { %v103_v39 = vrot.slane %v98_v37, %v102_v36  ;;  %v107_v40 = vrot.slane %v98_v37, %v106_v38  ;;  %v246_v42 = vld [vmem:[#allocation8 + $0x18] sm:$0xff]  ;;  %v249_v56 = vand.u32 2147483648, %v245_v45  ;;  %v444_v12 = vand.u32 1073741824, %v245_v45 }
  0x59   :  { %203 = vmatpush1.bf16.msra.mxu0 %v557_v8  ;;  %517 = vmatpush3.bf16.msra.mxu1 %v576_v19  ;;  %v250_v51 = vand.u32 2147483648, %v246_v42  ;;  %vm252_vm0 = vcmp.ne.s32.totalorder %v248_v50, 0  ;;  %vm251_vm2 = vcmp.ne.s32.totalorder %v247_v55, 0  ;;  %v489_v4 = vld [vmem:[%s835_s4] ss:$0 sm:$0xff]  ;;  %s675_s4 = scalar_lea.vmem %s459_s28, 256 }
  0x5a   :  { %204 = vmatprep.subr.bf16.mxu0 %v558_v9  ;;  %518 = vmatprep.subr.bf16.mxu1 %v577_v20  ;;  %vm253_vm3 = vcmp.ne.s32.totalorder %v249_v56, 0  ;;  %v443_v9 = vand.u32 1073741824, %v243_v44  ;;  %vm446_vm7 = vcmp.ne.s32.totalorder %v444_v12, 0  ;;  %p676_p4 = scmp.ne.s32.totalorder %s459_s28, %s675_s4  ;;  %p681_p6 = scmp.lt.s32.totalorder %s675_s4, %s675_s4 }
  0x5b   :  { %vm254_vm1 = vcmp.ne.s32.totalorder %v250_v51, 0  ;;  %vm509_vm5 = vmpackc.low %vm253_vm3, %vm251_vm2 }
  0x5c   :  { %vm506_vm4 = vmpackc.low %vm254_vm1, %vm252_vm0  ;;  %vm445_vm6 = vcmp.ne.s32.totalorder %v443_v9, 0  ;;  %p682_p7 = por %p681_p6, %p680_p5 }
  0x5d   :  { %205 = vmatpush1.bf16.msra.mxu0 %v560_v11  ;;  %519 = vmatpush3.bf16.msra.mxu1 %v578_v22 }
  0x5e   :  { %206 = vmatprep.subr.bf16.mxu0 %v561_v13  ;;  %520 = vmatprep.subr.bf16.mxu1 %v579_v24  ;;  %p683_p8 = pnand %p682_p7, %p676_p4 }
  0x61   :  { %207 = vmatpush1.bf16.msra.mxu0 %v563_v17  ;;  %521 = vmatpush3.bf16.msra.mxu1 %v580_v26 }
  0x62   :  { %208 = vmatprep.subr.bf16.mxu0 %v564_v18  ;;  %522 = vmatprep.subr.bf16.mxu1 %v581_v28 }
  0x65   :  { %209 = vmatpush1.bf16.msra.mxu0 %v566_v21  ;;  %523 = vmatpush3.bf16.msra.mxu1 %v582_v29 }
  0x66   :  { %210 = vmatprep.subr.bf16.mxu0 %v567_v23  ;;  %524 = vmatprep.subr.bf16.mxu1 %v583_v30 }
  0x69   :  { %211 = vmatpush1.bf16.msra.mxu0 %v569_v25  ;;  %525 = vmatpush3.bf16.msra.mxu1 %v584_v31 }
  0x6a   :  { %526 = vmatprep.subr.bf16.mxu1 %v585_v32 }
  0x6c   :  { %229 = vmatmul.mubr.bf16.vlgmr.msra.gmra.mrb[0].mxu0 %v570_v27 }
  0x6d   :  { %527 = vmatpush3.bf16.msra.mxu1 %v586_v33 }
 0x13f   :  { %v230_v43 = vpop.f32.mrb[0].mxu0 }
 0x140   :  { %v231_v46 = vadd.f32 %v230_v43, %v103_v39  ;;  %v232_v47 = vpop.f32.mrb[1].mxu0 }
 0x141   :  { %v233_v48 = vadd.f32 %v232_v47, %v107_v40  ;;  %v234_v49 = vpop.f32.mrb[2].mxu0 }
 0x142   :  { %v239_v52 = vmax.f32 %v231_v46, 0.0  ;;  %v235_v53 = vadd.f32 %v234_v49, %v103_v39  ;;  %v236_v54 = vpop.f32.mrb[3].mxu0 }
 0x143   :  { %v240_v57 = vmax.f32 %v233_v48, 0.0  ;;  %v237_v58 = vadd.f32 %v236_v54, %v107_v40 }
 0x144   :  { %v241_v59 = vmax.f32 %v235_v53, 0.0  ;;  %v255_v61 = vmul.f32 2.0, %v239_v52 }
 0x145   :  { %v242_v60 = vmax.f32 %v237_v58, 0.0  ;;  %v256_v63 = vmul.f32 2.0, %v240_v57 }
 0x146   :  { %v257_v62 = vmul.f32 2.0, %v241_v59 }
 0x147   :  { %v258_v0 = vmul.f32 2.0, %v242_v60 }
 0x148   :  { %v510_v1 = vpack.c.bf16 %v257_v62, %v255_v61 }
 0x149   :  { %v507_v2 = vpack.c.bf16 %v258_v0, %v256_v63 }
 0x14b   :  { %508 = vmatprep.mubr.msk.bf16.mxu1 %vm506_vm4, %v507_v2 }
 0x14c   :  { %511 = vmatmul.mubr.msk.bf16.vlgmr.msra.gmra.mrb[0].mxu1 %vm509_vm5, %v510_v1 }
 0x21f   :  { %v528_v3 = vpop.f32.mrb[0].mxu1 }
 0x220   :  { %v529_v5 = vpop.f32.mrb[1].mxu1 }
 0x221   :  { %v530_v6 = vadd.f32 %v529_v5, %v528_v3  ;;  %v531_v7 = vpop.f32.mrb[2].mxu1 }
 0x222   :  { %v532_v8 = vpop.f32.mrb[3].mxu1 }
 0x223   :  { %v435_v10 = vadd.f32 %v530_v6, %v489_v4  ;;  %v533_v11 = vadd.f32 %v532_v8, %v531_v7 }
 0x225   :  { %v441_v13 = vmax.f32 %v435_v10, 0.0  ;;  %v438_v14 = vadd.f32 %v533_v11, %v489_v4 }
 0x227   :  { %v447_v15 = vmul.f32 2.0, %v441_v13  ;;  %v442_v16 = vmax.f32 %v438_v14, 0.0 }
 0x229   :  { %v448_v17 = vmul.f32 2.0, %v442_v16  ;;  %v449_v18 = vsel %vm445_vm6, %v447_v15, 0.0 }
 0x22a   :  { %451 = vst [vmem:[#allocation10] sm:$0xff] %v449_v18 }
 0x22b   :  { %v450_v19 = vsel %vm446_vm7, %v448_v17, 0.0 }
 0x22c   :  { %452 = vst [vmem:[#allocation10 + $0x8] sm:$0xff] %v450_v19 }
 0x22d   :  { %686 = shalt.err (!%p683_p8)
}
 0x22e   :  { %s687_s9 = scalar_lea.hbm %s837_s6, 256 }
 0x22f   :  { %p688_p9 = scmp.ne.s32.totalorder %s837_s6, %s687_s9  ;;  %p691_p10 = scmp.lt.u32.totalorder %s687_s9, %s837_s6 }
 0x231   :  { %p693_p11 = pnand %p691_p10, %p688_p9 }
 0x233   :  { %696 = shalt.err (!%p693_p11)
}
 0x234   :  { %464 = dma.vmem_to_hbm [thread:$0]  %s459_s28, 256, %s837_s6, [#allocation4], %s706_s7, %s706_s7, %s707_s8  }
 0x235   :  { %703 = dma.done.wait [#allocation4], 256  }
 0x236   :  { %704 = vsyncadd [#allocation4], 4294967040 }
 0x237   :  { %468 = vsyncpa [#allocation3], 1 }
 0x238   :  { %469 = vsyncpa [#allocation6], 1 }
 0x239   :  { %470 = vsyncpa [#allocation9], 1 }
 0x23a   :  { %471 = vsyncpa [#allocation4], 1 }

</bundles_post_ra>
